<compile_context>
chip_gen: v7x
topology: tpu7x:2x2x1
jax: 0.10.0
libtpu: 0.0.40
codegen_flags: <defaults>
</compile_context>

<pallas_src>
import functools

import jax
import jax.numpy as jnp
from jax import lax
from jax.experimental import pallas as pl
from jax.experimental.pallas import tpu as pltpu  # noqa: F401  (TPU backend)

_HI = lax.Precision.HIGHEST


def _mhsa_kernel(h_ref, rg_ref, wqkv_ref, bqkv_ref, wot_ref, bo_ref, out_ref,
                 *, num_heads):
    x = h_ref[...]                                   # (N, d_model)
    rg = rg_ref[...]                                 # (N, N)
    d_model = x.shape[1]
    d_k = d_model // num_heads

    # Fused Q/K/V projection: one MXU push, K = d_model, N = 3*d_model.
    qkv = jnp.dot(x, wqkv_ref[...], precision=_HI,
                  preferred_element_type=jnp.float32)
    qkv = qkv + bqkv_ref[...]                        # (N, 3*d_model)

    scale = 1.0 / jnp.sqrt(jnp.float32(d_k))
    # q . k^T : contract the d_k (last) dims -> (N, N)
    dn_t = (((1,), (1,)), ((), ()))

    ctx_heads = []
    for h in range(num_heads):                       # static unroll (num_heads small)
        q = qkv[:, h * d_k:(h + 1) * d_k] * scale                    # fold scale into q
        k = qkv[:, d_model + h * d_k: d_model + (h + 1) * d_k]
        v = qkv[:, 2 * d_model + h * d_k: 2 * d_model + (h + 1) * d_k]

        scores = lax.dot_general(q, k, dn_t, precision=_HI,
                                 preferred_element_type=jnp.float32)
        scores = scores * rg                         # elementwise rg (before softmax)

        m = jnp.max(scores, axis=-1, keepdims=True)
        e = jnp.exp(scores - m)
        denom = jnp.sum(e, axis=-1, keepdims=True)
        attn = e / denom                             # exact normalisation

        ctx_heads.append(jnp.dot(attn, v, precision=_HI,
                                 preferred_element_type=jnp.float32))

    # Concatenate heads along features (matches torch's transpose+view ordering)
    # and do ONE output projection + bias; output written exactly once.
    ctx = jnp.concatenate(ctx_heads, axis=-1)        # (N, d_model)
    out = jnp.dot(ctx, wot_ref[...], precision=_HI,
                  preferred_element_type=jnp.float32)
    out_ref[...] = out + bo_ref[...]
    # TODO(synk): for large N / d_model, switch to a flash-style tiled grid with
    # lane-dense (>=128) output slabs and per-generation VMEM-sized tiles.


def multi_head_self_attention(H, rg, params, num_heads):
    N, d_model = H.shape

    # One-time wrapper-side weight prep (tiny XLA ops): fuse + pre-transpose so
    # every in-kernel contraction is a plain ((1,),(0,)) MXU feed.
    wqkv_t = jnp.concatenate(
        [params["wq"], params["wk"], params["wv"]], axis=0).T      # (d_model, 3*d_model)
    bqkv = jnp.concatenate(
        [params["bq"], params["bk"], params["bv"]]).reshape(1, 3 * d_model)
    wot = params["wo"].T                                           # (d_model, d_model)
    bo2 = params["bo"].reshape(1, d_model)

    kernel = functools.partial(_mhsa_kernel, num_heads=num_heads)
    # No grid: every operand is a single full-array VMEM block, loaded once.
    return pl.pallas_call(
        kernel,
        out_shape=jax.ShapeDtypeStruct((N, d_model), jnp.float32),
    )(H, rg, wqkv_t, bqkv, wot, bo2)


def reference(H, rg, params, num_heads):
    """Pure-JAX reproduction of the PyTorch forward pass."""
    N, d_model = H.shape
    d_k = d_model // num_heads
    hp = functools.partial(jnp.dot, precision=_HI)
    q = hp(H, params["wq"].T) + params["bq"]
    k = hp(H, params["wk"].T) + params["bk"]
    v = hp(H, params["wv"].T) + params["bv"]
    q = q.reshape(N, num_heads, d_k).transpose(1, 0, 2)
    k = k.reshape(N, num_heads, d_k).transpose(1, 0, 2)
    v = v.reshape(N, num_heads, d_k).transpose(1, 0, 2)
    scores = jnp.einsum("hnd,hmd->hnm", q, k,
                        precision=_HI) / jnp.sqrt(jnp.float32(d_k))
    scores = scores * rg[None]
    attn = jax.nn.softmax(scores, axis=-1)
    ctx = jnp.einsum("hnm,hmd->hnd", attn, v, precision=_HI)
    ctx = ctx.transpose(1, 0, 2).reshape(N, d_model)
    return hp(ctx, params["wo"].T) + params["bo"]


def init_params(key, d_model):
    # xavier_uniform_ for square (d_model, d_model) weights; zero biases.
    bound = (6.0 / (d_model + d_model)) ** 0.5
    ks = jax.random.split(key, 4)

    def xavier(k):
        return jax.random.uniform(k, (d_model, d_model), jnp.float32, -bound, bound)

    zeros = jnp.zeros((d_model,), jnp.float32)
    return {
        "wq": xavier(ks[0]), "bq": zeros,
        "wk": xavier(ks[1]), "bk": zeros,
        "wv": xavier(ks[2]), "bv": zeros,
        "wo": xavier(ks[3]), "bo": zeros,
    }


if __name__ == "__main__":
    N = 8          # sequence / node count
    d_model = 32
    num_heads = 4

    root = jax.random.PRNGKey(0)
    k_param, k_h, k_rg = jax.random.split(root, 3)

    params = init_params(k_param, d_model)
    H = jax.random.normal(k_h, (N, d_model), jnp.float32)
    rg = jax.random.uniform(k_rg, (N, N), jnp.float32)   # stands in for rwr.rg

    out = multi_head_self_attention(H, rg, params, num_heads)
    out = jax.block_until_ready(out)

    ref = reference(H, rg, params, num_heads)
    max_err = float(jnp.max(jnp.abs(out - ref)))
    # Generous-but-meaningful bound: a real semantic bug (wrong head order,
    # missing rg, etc.) produces O(0.1) errors; matmul rounding stays well below.
    assert max_err < 5e-3, f"mismatch vs reference: {max_err}"

    print("KERNEL_OK")
</pallas_src>

<mosaic_0001>
module attributes {stable_mosaic.version = 11 : i64} {
  func.func @_mhsa_kernel(%arg0: memref<8x32xf32, #tpu.memory_space<vmem>>, %arg1: memref<8x8xf32, #tpu.memory_space<vmem>>, %arg2: memref<32x96xf32, #tpu.memory_space<vmem>>, %arg3: memref<1x96xf32, #tpu.memory_space<vmem>>, %arg4: memref<32x32xf32, #tpu.memory_space<vmem>>, %arg5: memref<1x32xf32, #tpu.memory_space<vmem>>, %arg6: memref<8x32xf32, #tpu.memory_space<vmem>>) attributes {dimension_semantics = [], scalar_prefetch = 0 : i64, scratch_operands = 0 : i64, tpu.core_type = #tpu.core_type<tc>} {
    %c0 = arith.constant 0 : index
    %c0_0 = arith.constant 0 : index
    %0 = vector.load %arg0[%c0, %c0_0] : memref<8x32xf32, #tpu.memory_space<vmem>>, vector<8x32xf32>
    %c0_1 = arith.constant 0 : index
    %c0_2 = arith.constant 0 : index
    %1 = vector.load %arg1[%c0_1, %c0_2] : memref<8x8xf32, #tpu.memory_space<vmem>>, vector<8x8xf32>
    %c0_3 = arith.constant 0 : index
    %c0_4 = arith.constant 0 : index
    %2 = vector.load %arg2[%c0_3, %c0_4] : memref<32x96xf32, #tpu.memory_space<vmem>>, vector<32x96xf32>
    %cst = arith.constant dense<0.000000e+00> : vector<8x96xf32>
    %3 = tpu.matmul %0, %2, %cst {dimension_numbers = #tpu.dot_dimension_numbers<[1], [0], [0], [1], [0, 0, 1, 1], [], []>, precision = #tpu.contract_precision<fp32>} : vector<8x32xf32>, vector<32x96xf32>, vector<8x96xf32> -> vector<8x96xf32>
    %c0_5 = arith.constant 0 : index
    %c0_6 = arith.constant 0 : index
    %4 = vector.load %arg3[%c0_5, %c0_6] : memref<1x96xf32, #tpu.memory_space<vmem>>, vector<1x96xf32>
    %5 = vector.broadcast %4 : vector<1x96xf32> to vector<8x96xf32>
    %6 = arith.addf %3, %5 : vector<8x96xf32>
    %cst_7 = arith.constant 8.000000e+00 : f32
    %7 = math.sqrt %cst_7 : f32
    %cst_8 = arith.constant 1.000000e+00 : f32
    %8 = arith.divf %cst_8, %7 : f32
    %9 = vector.extract_strided_slice %6 {offsets = [0, 0], sizes = [8, 8], strides = [1, 1]} : vector<8x96xf32> to vector<8x8xf32>
    %10 = vector.broadcast %8 : f32 to vector<8x8xf32>
    %11 = arith.mulf %9, %10 : vector<8x8xf32>
    %12 = vector.extract_strided_slice %6 {offsets = [0, 32], sizes = [8, 8], strides = [1, 1]} : vector<8x96xf32> to vector<8x8xf32>
    %13 = vector.extract_strided_slice %6 {offsets = [0, 64], sizes = [8, 8], strides = [1, 1]} : vector<8x96xf32> to vector<8x8xf32>
    %cst_9 = arith.constant dense<0.000000e+00> : vector<8x8xf32>
    %14 = tpu.matmul %11, %12, %cst_9 {dimension_numbers = #tpu.dot_dimension_numbers<[1], [1], [0], [0], [0, 0, 1, 0], [], []>, precision = #tpu.contract_precision<fp32>} : vector<8x8xf32>, vector<8x8xf32>, vector<8x8xf32> -> vector<8x8xf32>
    %15 = arith.mulf %14, %1 : vector<8x8xf32>
    %cst_10 = arith.constant dense<0xFF800000> : vector<8xf32>
    %16 = vector.multi_reduction <maximumf>, %15, %cst_10 [1] : vector<8x8xf32> to vector<8xf32>
    %17 = vector.shape_cast %16 : vector<8xf32> to vector<8x1xf32>
    %18 = vector.broadcast %17 : vector<8x1xf32> to vector<8x8xf32>
    %19 = arith.subf %15, %18 : vector<8x8xf32>
    %20 = math.exp %19 : vector<8x8xf32>
    %cst_11 = arith.constant dense<0.000000e+00> : vector<8xf32>
    %21 = vector.multi_reduction <add>, %20, %cst_11 [1] : vector<8x8xf32> to vector<8xf32>
    %22 = vector.shape_cast %21 : vector<8xf32> to vector<8x1xf32>
    %23 = vector.broadcast %22 : vector<8x1xf32> to vector<8x8xf32>
    %24 = arith.divf %20, %23 : vector<8x8xf32>
    %cst_12 = arith.constant dense<0.000000e+00> : vector<8x8xf32>
    %25 = tpu.matmul %24, %13, %cst_12 {dimension_numbers = #tpu.dot_dimension_numbers<[1], [0], [0], [1], [0, 0, 1, 1], [], []>, precision = #tpu.contract_precision<fp32>} : vector<8x8xf32>, vector<8x8xf32>, vector<8x8xf32> -> vector<8x8xf32>
    %26 = vector.extract_strided_slice %6 {offsets = [0, 8], sizes = [8, 8], strides = [1, 1]} : vector<8x96xf32> to vector<8x8xf32>
    %27 = vector.broadcast %8 : f32 to vector<8x8xf32>
    %28 = arith.mulf %26, %27 : vector<8x8xf32>
    %29 = vector.extract_strided_slice %6 {offsets = [0, 40], sizes = [8, 8], strides = [1, 1]} : vector<8x96xf32> to vector<8x8xf32>
    %30 = vector.extract_strided_slice %6 {offsets = [0, 72], sizes = [8, 8], strides = [1, 1]} : vector<8x96xf32> to vector<8x8xf32>
    %cst_13 = arith.constant dense<0.000000e+00> : vector<8x8xf32>
    %31 = tpu.matmul %28, %29, %cst_13 {dimension_numbers = #tpu.dot_dimension_numbers<[1], [1], [0], [0], [0, 0, 1, 0], [], []>, precision = #tpu.contract_precision<fp32>} : vector<8x8xf32>, vector<8x8xf32>, vector<8x8xf32> -> vector<8x8xf32>
    %32 = arith.mulf %31, %1 : vector<8x8xf32>
    %cst_14 = arith.constant dense<0xFF800000> : vector<8xf32>
    %33 = vector.multi_reduction <maximumf>, %32, %cst_14 [1] : vector<8x8xf32> to vector<8xf32>
    %34 = vector.shape_cast %33 : vector<8xf32> to vector<8x1xf32>
    %35 = vector.broadcast %34 : vector<8x1xf32> to vector<8x8xf32>
    %36 = arith.subf %32, %35 : vector<8x8xf32>
    %37 = math.exp %36 : vector<8x8xf32>
    %cst_15 = arith.constant dense<0.000000e+00> : vector<8xf32>
    %38 = vector.multi_reduction <add>, %37, %cst_15 [1] : vector<8x8xf32> to vector<8xf32>
    %39 = vector.shape_cast %38 : vector<8xf32> to vector<8x1xf32>
    %40 = vector.broadcast %39 : vector<8x1xf32> to vector<8x8xf32>
    %41 = arith.divf %37, %40 : vector<8x8xf32>
    %cst_16 = arith.constant dense<0.000000e+00> : vector<8x8xf32>
    %42 = tpu.matmul %41, %30, %cst_16 {dimension_numbers = #tpu.dot_dimension_numbers<[1], [0], [0], [1], [0, 0, 1, 1], [], []>, precision = #tpu.contract_precision<fp32>} : vector<8x8xf32>, vector<8x8xf32>, vector<8x8xf32> -> vector<8x8xf32>
    %43 = vector.extract_strided_slice %6 {offsets = [0, 16], sizes = [8, 8], strides = [1, 1]} : vector<8x96xf32> to vector<8x8xf32>
    %44 = vector.broadcast %8 : f32 to vector<8x8xf32>
    %45 = arith.mulf %43, %44 : vector<8x8xf32>
    %46 = vector.extract_strided_slice %6 {offsets = [0, 48], sizes = [8, 8], strides = [1, 1]} : vector<8x96xf32> to vector<8x8xf32>
    %47 = vector.extract_strided_slice %6 {offsets = [0, 80], sizes = [8, 8], strides = [1, 1]} : vector<8x96xf32> to vector<8x8xf32>
    %cst_17 = arith.constant dense<0.000000e+00> : vector<8x8xf32>
    %48 = tpu.matmul %45, %46, %cst_17 {dimension_numbers = #tpu.dot_dimension_numbers<[1], [1], [0], [0], [0, 0, 1, 0], [], []>, precision = #tpu.contract_precision<fp32>} : vector<8x8xf32>, vector<8x8xf32>, vector<8x8xf32> -> vector<8x8xf32>
    %49 = arith.mulf %48, %1 : vector<8x8xf32>
    %cst_18 = arith.constant dense<0xFF800000> : vector<8xf32>
    %50 = vector.multi_reduction <maximumf>, %49, %cst_18 [1] : vector<8x8xf32> to vector<8xf32>
    %51 = vector.shape_cast %50 : vector<8xf32> to vector<8x1xf32>
    %52 = vector.broadcast %51 : vector<8x1xf32> to vector<8x8xf32>
    %53 = arith.subf %49, %52 : vector<8x8xf32>
    %54 = math.exp %53 : vector<8x8xf32>
    %cst_19 = arith.constant dense<0.000000e+00> : vector<8xf32>
    %55 = vector.multi_reduction <add>, %54, %cst_19 [1] : vector<8x8xf32> to vector<8xf32>
    %56 = vector.shape_cast %55 : vector<8xf32> to vector<8x1xf32>
    %57 = vector.broadcast %56 : vector<8x1xf32> to vector<8x8xf32>
    %58 = arith.divf %54, %57 : vector<8x8xf32>
    %cst_20 = arith.constant dense<0.000000e+00> : vector<8x8xf32>
    %59 = tpu.matmul %58, %47, %cst_20 {dimension_numbers = #tpu.dot_dimension_numbers<[1], [0], [0], [1], [0, 0, 1, 1], [], []>, precision = #tpu.contract_precision<fp32>} : vector<8x8xf32>, vector<8x8xf32>, vector<8x8xf32> -> vector<8x8xf32>
    %60 = vector.extract_strided_slice %6 {offsets = [0, 24], sizes = [8, 8], strides = [1, 1]} : vector<8x96xf32> to vector<8x8xf32>
    %61 = vector.broadcast %8 : f32 to vector<8x8xf32>
    %62 = arith.mulf %60, %61 : vector<8x8xf32>
    %63 = vector.extract_strided_slice %6 {offsets = [0, 56], sizes = [8, 8], strides = [1, 1]} : vector<8x96xf32> to vector<8x8xf32>
    %64 = vector.extract_strided_slice %6 {offsets = [0, 88], sizes = [8, 8], strides = [1, 1]} : vector<8x96xf32> to vector<8x8xf32>
    %cst_21 = arith.constant dense<0.000000e+00> : vector<8x8xf32>
    %65 = tpu.matmul %62, %63, %cst_21 {dimension_numbers = #tpu.dot_dimension_numbers<[1], [1], [0], [0], [0, 0, 1, 0], [], []>, precision = #tpu.contract_precision<fp32>} : vector<8x8xf32>, vector<8x8xf32>, vector<8x8xf32> -> vector<8x8xf32>
    %66 = arith.mulf %65, %1 : vector<8x8xf32>
    %cst_22 = arith.constant dense<0xFF800000> : vector<8xf32>
    %67 = vector.multi_reduction <maximumf>, %66, %cst_22 [1] : vector<8x8xf32> to vector<8xf32>
    %68 = vector.shape_cast %67 : vector<8xf32> to vector<8x1xf32>
    %69 = vector.broadcast %68 : vector<8x1xf32> to vector<8x8xf32>
    %70 = arith.subf %66, %69 : vector<8x8xf32>
    %71 = math.exp %70 : vector<8x8xf32>
    %cst_23 = arith.constant dense<0.000000e+00> : vector<8xf32>
    %72 = vector.multi_reduction <add>, %71, %cst_23 [1] : vector<8x8xf32> to vector<8xf32>
    %73 = vector.shape_cast %72 : vector<8xf32> to vector<8x1xf32>
    %74 = vector.broadcast %73 : vector<8x1xf32> to vector<8x8xf32>
    %75 = arith.divf %71, %74 : vector<8x8xf32>
    %cst_24 = arith.constant dense<0.000000e+00> : vector<8x8xf32>
    %76 = tpu.matmul %75, %64, %cst_24 {dimension_numbers = #tpu.dot_dimension_numbers<[1], [0], [0], [1], [0, 0, 1, 1], [], []>, precision = #tpu.contract_precision<fp32>} : vector<8x8xf32>, vector<8x8xf32>, vector<8x8xf32> -> vector<8x8xf32>
    %77 = tpu.concatenate %25, %42, %59, %76 in 1 : vector<8x8xf32>, vector<8x8xf32>, vector<8x8xf32>, vector<8x8xf32> -> vector<8x32xf32>
    %c0_25 = arith.constant 0 : index
    %c0_26 = arith.constant 0 : index
    %78 = vector.load %arg4[%c0_25, %c0_26] : memref<32x32xf32, #tpu.memory_space<vmem>>, vector<32x32xf32>
    %cst_27 = arith.constant dense<0.000000e+00> : vector<8x32xf32>
    %79 = tpu.matmul %77, %78, %cst_27 {dimension_numbers = #tpu.dot_dimension_numbers<[1], [0], [0], [1], [0, 0, 1, 1], [], []>, precision = #tpu.contract_precision<fp32>} : vector<8x32xf32>, vector<32x32xf32>, vector<8x32xf32> -> vector<8x32xf32>
    %c0_28 = arith.constant 0 : index
    %c0_29 = arith.constant 0 : index
    %80 = vector.load %arg5[%c0_28, %c0_29] : memref<1x32xf32, #tpu.memory_space<vmem>>, vector<1x32xf32>
    %81 = vector.broadcast %80 : vector<1x32xf32> to vector<8x32xf32>
    %82 = arith.addf %79, %81 : vector<8x32xf32>
    %c0_30 = arith.constant 0 : index
    %c0_31 = arith.constant 0 : index
    %83 = vector.load %arg6[%c0_30, %c0_31] : memref<8x32xf32, #tpu.memory_space<vmem>>, vector<8x32xf32>
    tpu.vector_store %arg6[%c0_30, %c0_31], %82 {strides = array<i32>} : memref<8x32xf32, #tpu.memory_space<vmem>>, vector<8x32xf32>,
    return
  }
}

</mosaic_0001>

<bundles_post_ra>
// kernel: tpu_custom_call.1
= control target key start
LH: loop header
LB: loop body
LE: loop exit
PB: predicated region body
PF: predicated region fallthrough
CT: control target
= control target key end

     0   :  { %11 = vsyncpa [#allocation3], 0  ;;  %s6035_s0 = inlined_call_operand.hbm [shape: f32[8,32], index: 0, kind: input, shape index: {}]   ;;  %s6036_s1 = inlined_call_operand.hbm [shape: f32[8,8], index: 1, kind: input, shape index: {}]   ;;  %s6037_s2 = inlined_call_operand.hbm [shape: f32[32,96], index: 2, kind: input, shape index: {}]   ;;  %s6038_s3 = inlined_call_operand.vmem [shape: f32[1,96], index: 3, kind: input, shape index: {}]   ;;  %s6039_s4 = inlined_call_operand.hbm [shape: f32[32,32], index: 4, kind: input, shape index: {}]   ;;  %s6040_s5 = inlined_call_operand.vmem [shape: f32[1,32], index: 5, kind: input, shape index: {}]   ;;  %s6041_s6 = inlined_call_operand.hbm [shape: f32[8,32], index: 6, kind: output, shape index: {}]  }
   0x1   :  { %12 = vsyncpa [#allocation6], 0 }
   0x2   :  { %13 = vsyncpa [#allocation9], 0 }
   0x3   :  { %14 = vsyncpa [#allocation4], 0  ;;  %s5645_s21 = smov [#allocation5]   ;;  %s5646_s23 = smov [#allocation2]  }
   0x4   :  { %s31_s22 = sshll.u32 %s5645_s21, 4  ;;  %s21_s24 = sshll.u32 %s5646_s23, 4  ;;  %s32_s22 = int_to_ptr.vmem [resolvable:$true] %s31_s22  ;;  %s22_s24 = int_to_ptr.vmem [resolvable:$true] %s21_s24 }
   0x5   :  { %s5527_s27 = scalar_lea.hbm %s6036_s1, 128 }
   0x6   :  { %p5528_p0 = scmp.ne.s32.totalorder %s6036_s1, %s5527_s27  ;;  %p5531_p1 = scmp.lt.u32.totalorder %s5527_s27, %s6036_s1 }
   0x8   :  { %p5533_p2 = pnand %p5531_p1, %p5528_p0 }
   0xa   :  { %5536 = shalt.err (!%p5533_p2)
}
   0xb   :  { %s5537_s8 = scalar_lea.vmem %s32_s22, 128  ;;  %p5542_p4 = scmp.lt.s32.totalorder %s32_s22, %s32_s22 }
   0xc   :  { %p5538_p3 = scmp.ne.s32.totalorder %s32_s22, %s5537_s8  ;;  %p5543_p5 = scmp.lt.s32.totalorder %s5537_s8, %s5537_s8 }
   0xe   :  { %p5544_p6 = por %p5543_p5, %p5542_p4 }
  0x10   :  { %p5545_p7 = pnand %p5544_p6, %p5538_p3 }
  0x12   :  { %5548 = shalt.err (!%p5545_p7)
}
  0x13   :  { %34 = dma.hbm_to_vmem [thread:$0]  %s6036_s1, 128, %s32_s22, [#allocation6]  }
  0x14   :  { %s5549_s13 = scalar_lea.hbm %s6035_s0, 128 }
  0x15   :  { %p5550_p8 = scmp.ne.s32.totalorder %s6035_s0, %s5549_s13  ;;  %p5553_p9 = scmp.lt.u32.totalorder %s5549_s13, %s6035_s0 }
  0x17   :  { %p5555_p10 = pnand %p5553_p9, %p5550_p8 }
  0x19   :  { %5558 = shalt.err (!%p5555_p10)
}
  0x1a   :  { %s5559_s18 = scalar_lea.vmem %s22_s24, 128  ;;  %p5564_p12 = scmp.lt.s32.totalorder %s22_s24, %s22_s24 }
  0x1b   :  { %p5560_p11 = scmp.ne.s32.totalorder %s22_s24, %s5559_s18  ;;  %p5565_p13 = scmp.lt.s32.totalorder %s5559_s18, %s5559_s18 }
  0x1d   :  { %p5566_p0 = por %p5565_p13, %p5564_p12 }
  0x1f   :  { %p5567_p1 = pnand %p5566_p0, %p5560_p11 }
  0x21   :  { %5570 = shalt.err (!%p5567_p1)
}
  0x22   :  { %24 = dma.hbm_to_vmem [thread:$0]  %s6035_s0, 128, %s22_s24, [#allocation3]  }
  0x23   :  { %s5647_s20 = smov [#allocation7]   ;;  %s5571_s25 = scalar_lea.hbm %s6037_s2, 512 }
  0x24   :  { %s40_s21 = sshll.u32 %s5647_s20, 4  ;;  %p5572_p2 = scmp.ne.s32.totalorder %s6037_s2, %s5571_s25  ;;  %s41_s21 = int_to_ptr.vmem [resolvable:$true] %s40_s21 }
  0x25   :  { %p5575_p3 = scmp.lt.u32.totalorder %s5571_s25, %s6037_s2 }
  0x27   :  { %p5577_p4 = pnand %p5575_p3, %p5572_p2 }
  0x29   :  { %5580 = shalt.err (!%p5577_p4)
}
  0x2a   :  { %s5581_s30 = scalar_lea.vmem %s41_s21, 512  ;;  %p5586_p6 = scmp.lt.s32.totalorder %s41_s21, %s41_s21 }
  0x2b   :  { %p5582_p5 = scmp.ne.s32.totalorder %s41_s21, %s5581_s30  ;;  %p5587_p7 = scmp.lt.s32.totalorder %s5581_s30, %s5581_s30 }
  0x2d   :  { %p5588_p8 = por %p5587_p7, %p5586_p6 }
  0x2f   :  { %p5589_p9 = pnand %p5588_p8, %p5582_p5 }
  0x31   :  { %5592 = shalt.err (!%p5589_p9)
}
  0x32   :  { %s5648_s0 = smov 128   ;;  %s5649_s24 = smov 8  }
  0x33   :  { %46 = dma.hbm_to_vmem [thread:$0]  %s6037_s2, 512, %s41_s21, [#allocation6], %s5648_s0, %s5648_s0, %s5649_s24  }
  0x34   :  { %s5650_s9 = smov [#allocation8]   ;;  %s5593_s13 = scalar_lea.hbm %s6039_s4, 512 }
  0x35   :  { %s54_s10 = sshll.u32 %s5650_s9, 4  ;;  %p5594_p10 = scmp.ne.s32.totalorder %s6039_s4, %s5593_s13  ;;  %s55_s10 = int_to_ptr.vmem [resolvable:$true] %s54_s10 }
  0x36   :  { %p5597_p11 = scmp.lt.u32.totalorder %s5593_s13, %s6039_s4 }
  0x38   :  { %p5599_p12 = pnand %p5597_p11, %p5594_p10 }
  0x3a   :  { %5602 = shalt.err (!%p5599_p12)
}
  0x3b   :  { %s5603_s18 = scalar_lea.vmem %s55_s10, 512  ;;  %p5608_p0 = scmp.lt.s32.totalorder %s55_s10, %s55_s10 }
  0x3c   :  { %p5604_p13 = scmp.ne.s32.totalorder %s55_s10, %s5603_s18  ;;  %p5609_p1 = scmp.lt.s32.totalorder %s5603_s18, %s5603_s18 }
  0x3e   :  { %p5610_p2 = por %p5609_p1, %p5608_p0 }
  0x40   :  { %p5611_p3 = pnand %p5610_p2, %p5604_p13 }
  0x42   :  { %5614 = shalt.err (!%p5611_p3)
}
  0x43   :  { %60 = dma.hbm_to_vmem [thread:$0]  %s6039_s4, 512, %s55_s10, [#allocation9], %s5648_s0, %s5648_s0, %s5649_s24  }
  0x44   :  { %5637 = dma.done.wait [#allocation3], 128  }
  0x45   :  { %5638 = vsyncadd [#allocation3], 4294967168 }
  0x46   :  { %5639 = dma.done.wait [#allocation6], 640  }
  0x47   :  { %5640 = vsyncadd [#allocation6], 4294966656 }
  0x48   :  { %5641 = dma.done.wait [#allocation9], 512  }
  0x49   :  { %5642 = vsyncadd [#allocation9], 4294966784  ;;  %v5651_v0 = vmov 0.0|0.0   ;;  %vm5652_vm0 = vmmov 0   ;;  %v5653_v1 = vmov 0.0   ;;  %vm88_vm1 = vcmask 261120  }
  0x4a   :  { %5315 = vmatprep.subr.bf16.mxu1 %v5651_v0  ;;  %5333 = vmatprep.subr.bf16.mxu0 %v5651_v0  ;;  %v77_v2 = vld [vmem:[#allocation7] sm:$0xff]  ;;  %v78_v3 = vld [vmem:[#allocation7 + $0x8] sm:$0xff]  ;;  %v79_v4 = vld [vmem:[#allocation7 + $0x10] sm:$0xff]  ;;  %s5654_s20 = smov 88   ;;  %s5655_s21 = smov 96   ;;  %vm581_vm2 = vcmask 64512  }
  0x4b   :  { %4951 = vmatprep.mubr.msk.f32.mxu1 %vm5652_vm0, %v5653_v1  ;;  %4984 = vmatprep.mubr.msk.f32.mxu0 %vm5652_vm0, %v5653_v1  ;;  %v93_v5 = vand.u32 4294901760, %v77_v2  ;;  %v96_v6 = vand.u32 4294901760, %v78_v3  ;;  %v80_v7 = vld [vmem:[#allocation7 + $0x18] sm:$0xff]  ;;  %v99_v8 = vand.u32 4294901760, %v79_v4  ;;  %v75_v9 = vld [vmem:[#allocation2] sm:$0xff]  ;;  %s5656_s22 = smov 112  }
  0x4c   :  { %v102_v10 = vand.u32 4294901760, %v80_v7  ;;  %v90_v11 = vsel %vm88_vm1, %v75_v9, 0  ;;  %v4785_v41 = vld [vmem:[%s6038_s3] ss:$0 sm:$0xff]  ;;  %s5657_s23 = smov 120   ;;  %s5658_s3 = smov 104  }
  0x4d   :  { %v5316_v12 = vpack.c.bf16 %v96_v6, %v93_v5  ;;  %v173_v13 = vsub.f32 %v77_v2, %v93_v5  ;;  %v180_v14 = vsub.f32 %v78_v3, %v96_v6  ;;  %v187_v15 = vsub.f32 %v79_v4, %v99_v8  ;;  %s5659_s25 = smov 80   ;;  %s5660_s26 = smov 72  }
  0x4e   :  { %v194_v16 = vsub.f32 %v80_v7, %v102_v10  ;;  %v161_v17 = vand.u32 4294901760, %v90_v11  ;;  %v5319_v18 = vpack.c.bf16 %v102_v10, %v99_v8  ;;  %s5661_s27 = smov 64   ;;  %s5662_s28 = smov 56   ;;  %vm4264_vm3 = vcmask 130048  }
  0x4f   :  { %5317 = vmatpush3.bf16.msra.mxu1 %v5316_v12  ;;  %5335 = vmatpush3.bf16.msra.mxu0 %v5316_v12  ;;  %v174_v19 = vand.u32 4294901760, %v173_v13  ;;  %v181_v20 = vand.u32 4294901760, %v180_v14  ;;  %v188_v21 = vand.u32 4294901760, %v187_v15  ;;  %v5328_v39 = vpack.c.bf16 %v180_v14, %v173_v13  ;;  %s5663_s29 = smov 48   ;;  %s5664_s30 = smov 40  }
  0x50   :  { %5318 = vmatprep.subr.bf16.mxu1 %v5651_v0  ;;  %5336 = vmatprep.subr.bf16.mxu0 %v5651_v0  ;;  %v162_v22 = vsub.f32 %v90_v11, %v161_v17  ;;  %v195_v23 = vand.u32 4294901760, %v194_v16  ;;  %v5331_v40 = vpack.c.bf16 %v194_v16, %v187_v15  ;;  %s5665_s0 = smov 16   ;;  %vm4266_vm4 = vcmask 195584   ;;  %s5667_s9 = smov [#allocation10]  }
  0x51   :  { %v175_v24 = vsub.f32 %v173_v13, %v174_v19  ;;  %v182_v25 = vsub.f32 %v180_v14, %v181_v20  ;;  %v189_v26 = vsub.f32 %v187_v15, %v188_v21  ;;  %v5340_v31 = vpack.c.bf16 %v181_v20, %v174_v19  ;;  %s4774_s10 = sshll.u32 %s5667_s9, 4  ;;  %s4775_s10 = int_to_ptr.vmem [resolvable:$true] %s4774_s10 }
  0x52   :  { %v163_v27 = vand.u32 4294901760, %v162_v22  ;;  %v196_v28 = vsub.f32 %v194_v16, %v195_v23  ;;  %v5343_v37 = vpack.c.bf16 %v195_v23, %v188_v21  ;;  %s5615_s11 = scalar_lea.vmem %s4775_s10, 128  ;;  %p5620_p5 = scmp.lt.s32.totalorder %s4775_s10, %s4775_s10 }
  0x53   :  { %5320 = vmatpush3.bf16.msra.mxu1 %v5319_v18  ;;  %5338 = vmatpush3.bf16.msra.mxu0 %v5319_v18  ;;  %v176_v29 = vand.u32 4294901760, %v175_v24  ;;  %v183_v30 = vand.u32 4294901760, %v182_v25  ;;  %v190_v34 = vand.u32 4294901760, %v189_v26  ;;  %p5616_p4 = scmp.ne.s32.totalorder %s4775_s10, %s5615_s11  ;;  %p5621_p6 = scmp.lt.s32.totalorder %s5615_s11, %s5615_s11 }
  0x54   :  { %v164_v32 = vsub.f32 %v162_v22, %v163_v27  ;;  %5321 = vmatprep.subr.bf16.mxu1 %v5651_v0  ;;  %5339 = vmatprep.subr.bf16.mxu0 %v5651_v0  ;;  %v197_v35 = vand.u32 4294901760, %v196_v28 }
  0x55   :  { %v5322_v33 = vpack.c.bf16 %v183_v30, %v176_v29  ;;  %p5622_p7 = por %p5621_p6, %p5620_p5 }
  0x56   :  { %v165_v36 = vand.u32 4294901760, %v164_v32  ;;  %4985 = vmatmul.mubr.f32.vlgmr.msra.gmra.mrb[0].mxu0 %v163_v27  ;;  %v5325_v38 = vpack.c.bf16 %v197_v35, %v190_v34 }
  0x57   :  { %5341 = vmatpush3.bf16.msra.mxu0 %v5340_v31  ;;  %4995 = vmatprep.mubr.msk.f32.mxu0 %vm5652_vm0, %v5653_v1  ;;  %p5623_p8 = pnand %p5622_p7, %p5616_p4 }
  0x58   :  { %4952 = vmatmul.mubr.f32.vlgmr.msra.gmra.mrb[0].mxu1 %v165_v36  ;;  %5342 = vmatprep.subr.bf16.mxu0 %v5651_v0 }
  0x59   :  { %5323 = vmatpush3.bf16.msra.mxu1 %v5322_v33  ;;  %4962 = vmatprep.mubr.msk.f32.mxu1 %vm5652_vm0, %v5653_v1 }
  0x5a   :  { %5324 = vmatprep.subr.bf16.mxu1 %v5651_v0 }
  0x5b   :  { %5344 = vmatpush3.bf16.msra.mxu0 %v5343_v37 }
  0x5c   :  { %5345 = vmatprep.subr.bf16.mxu0 %v5651_v0 }
  0x5d   :  { %5326 = vmatpush3.bf16.msra.mxu1 %v5325_v38 }
  0x5e   :  { %5327 = vmatprep.subr.bf16.mxu1 %v5651_v0  ;;  %4996 = vmatmul.mubr.f32.vlgmr.msra.gmra.mrb[0].mxu0 %v161_v17 }
  0x5f   :  { %5347 = vmatpush3.bf16.msra.mxu0 %v5316_v12  ;;  %5006 = vmatprep.mubr.msk.f32.mxu0 %vm5652_vm0, %v5653_v1 }
  0x60   :  { %4963 = vmatmul.mubr.f32.vlgmr.msra.gmra.mrb[0].mxu1 %v161_v17  ;;  %5348 = vmatprep.subr.bf16.mxu0 %v5651_v0 }
  0x61   :  { %5329 = vmatpush3.bf16.msra.mxu1 %v5328_v39  ;;  %4973 = vmatprep.mubr.msk.f32.mxu1 %vm5652_vm0, %v5653_v1 }
  0x62   :  { %5330 = vmatprep.subr.bf16.mxu1 %v5651_v0 }
  0x63   :  { %5350 = vmatpush3.bf16.msra.mxu0 %v5319_v18 }
  0x64   :  { %5069 = vmatprep.subr.mxu0 %v5653_v1 }
  0x65   :  { %5332 = vmatpush3.bf16.msra.mxu1 %v5331_v40 }
  0x66   :  { %5007 = vmatmul.mubr.f32.vlgmr.msra.gmra.mrb[0].mxu0 %v161_v17  ;;  %5009 = vmatprep.subr.mxu1 %v5653_v1 }
  0x67   :  { %5071 = vmatprep.mubr.msk.f32.mxu0 %vm5652_vm0, %v5653_v1 }
  0x68   :  { %4974 = vmatmul.mubr.f32.vlgmr.msra.gmra.mrb[0].mxu1 %v162_v22 }
  0x69   :  { %5011 = vmatprep.mubr.msk.f32.mxu1 %vm5652_vm0, %v5653_v1 }
 0x139   :  { %v573_v42 = vpop.f32.mrb[0].mxu0 }
 0x13a   :  { %v5008_v43 = vpop.f32.mrb[1].mxu0 }
 0x13b   :  { %v338_v44 = vpop.f32.mrb[0].mxu1 }
 0x13c   :  { %v5387_v45 = vadd.f32 %v4785_v41, %v338_v44  ;;  %v4975_v46 = vpop.f32.mrb[1].mxu1 }
 0x13e   :  { %v5787_v47 = vadd.f32 %v5387_v45, %v573_v42  ;;  %v76_v42 = vld [vmem:[#allocation5] sm:$0xff] }
 0x140   :  { %1499 = vrot.lane.b32.xlu1 %v5787_v47, %s5654_s20  ;;  %579 = vrot.lane.b32.xlu0 %v5787_v47, %s5655_s21  ;;  %v577_v48 = vmul.f32 0.35355338, %v5787_v47 }
 0x142   :  { %v583_v49 = vsel %vm581_vm2, %v577_v48, 0 }
 0x143   :  { %v5795_v50 = vand.u32 4294901760, %v583_v49 }
 0x144   :  { %2415 = vrot.lane.b32.xlu1 %v577_v48, %s5656_s22  ;;  %1497 = vrot.lane.b32.xlu0 %v577_v48, %s5657_s23 }
 0x145   :  { %v654_v51 = vsub.f32 %v583_v49, %v5795_v50 }
 0x147   :  { %v655_v52 = vand.u32 4294901760, %v654_v51 }
 0x148   :  { %3333 = vrot.lane.b32.xlu1 %v577_v48, %s5658_s3  ;;  %2417 = vrot.lane.b32.xlu0 %v5787_v47, %s5659_s25 }
 0x149   :  { %v656_v57 = vsub.f32 %v654_v51, %v655_v52 }
 0x14b   :  { %v657_v2 = vand.u32 4294901760, %v656_v57 }
 0x14c   :  { %3335 = vrot.lane.b32.xlu0 %v5787_v47, %s5660_s26 }
 0x1b2   :  { %v1500_v53 = vpop.permute.xlu1 %1499  ;;  %v580_v54 = vpop.permute.xlu0 %579 }
 0x1b3   :  { %v1503_v55 = vsel %vm581_vm2, %v1500_v53, 0  ;;  %v585_v56 = vsel %vm581_vm2, %v580_v54, 0 }
 0x1b4   :  { %v5800_v58 = vand.u32 4294901760, %v1503_v55  ;;  %v588_v59 = vand.u32 4294901760, %v585_v56 }
 0x1b6   :  { %v1583_v60 = vsub.f32 %v1503_v55, %v5800_v58  ;;  %v665_v61 = vsub.f32 %v585_v56, %v588_v59  ;;  %5010 = vmatpush3.xpose.msra.mxu1 %v588_v59  ;;  %5070 = vmatpush3.xpose.msra.mxu0 %v5800_v58  ;;  %v1498_v62 = vpop.permute.xlu0 %1497  ;;  %v2416_v14 = vpop.permute.xlu1 %2415 }
 0x1b7   :  { %v1501_v63 = vsel %vm581_vm2, %v1498_v62, 0  ;;  %5014 = vmatprep.subr.mxu1 %v5653_v1  ;;  %5074 = vmatprep.subr.mxu0 %v5653_v1  ;;  %v2419_v16 = vsel %vm581_vm2, %v2416_v14, 0 }
 0x1b8   :  { %v666_v3 = vand.u32 4294901760, %v665_v61  ;;  %v5807_v4 = vand.u32 4294901760, %v1501_v63  ;;  %v1584_v5 = vand.u32 4294901760, %v1583_v60  ;;  %v2489_v18 = vand.u32 4294901760, %v2419_v16 }
 0x1b9   :  { %5012 = vmatmul.mubr.f32.vlgmr.msra.gmra.mrb[2].mxu1 %v657_v2 }
 0x1ba   :  { %v667_v6 = vsub.f32 %v665_v61, %v666_v3  ;;  %v1572_v7 = vsub.f32 %v1501_v63, %v5807_v4  ;;  %5016 = vmatprep.mubr.msk.f32.mxu1 %vm5652_vm0, %v5653_v1  ;;  %v1585_v10 = vsub.f32 %v1583_v60, %v1584_v5  ;;  %v2418_v15 = vpop.permute.xlu0 %2417  ;;  %v2490_v20 = vsub.f32 %v2419_v16, %v2489_v18  ;;  %v3334_v28 = vpop.permute.xlu1 %3333 }
 0x1bb   :  { %v2421_v17 = vsel %vm581_vm2, %v2418_v15, 0  ;;  %v3337_v30 = vsel %vm581_vm2, %v3334_v28, 0 }
 0x1bc   :  { %v668_v8 = vand.u32 4294901760, %v667_v6  ;;  %v1573_v9 = vand.u32 4294901760, %v1572_v7  ;;  %v1586_v13 = vand.u32 4294901760, %v1585_v10  ;;  %v2424_v19 = vand.u32 4294901760, %v2421_v17 }
 0x1bd   :  { %v2491_v22 = vand.u32 4294901760, %v2490_v20  ;;  %v3407_v32 = vand.u32 4294901760, %v3337_v30 }
 0x1be   :  { %v1574_v11 = vsub.f32 %v1572_v7, %v1573_v9  ;;  %5015 = vmatpush3.xpose.msra.mxu1 %v668_v8  ;;  %v2501_v21 = vsub.f32 %v2421_v17, %v2424_v19  ;;  %v3336_v29 = vpop.permute.xlu0 %3335 }
 0x1bf   :  { %5019 = vmatprep.subr.mxu1 %v5653_v1  ;;  %v2492_v24 = vsub.f32 %v2490_v20, %v2491_v22  ;;  %v3339_v31 = vsel %vm581_vm2, %v3336_v29, 0  ;;  %v3408_v34 = vsub.f32 %v3337_v30, %v3407_v32 }
 0x1c0   :  { %v1575_v12 = vand.u32 4294901760, %v1574_v11  ;;  %v2502_v23 = vand.u32 4294901760, %v2501_v21  ;;  %v3342_v33 = vand.u32 4294901760, %v3339_v31 }
 0x1c1   :  { %5017 = vmatmul.mubr.f32.vlgmr.msra.gmra.mrb[2].mxu1 %v5795_v50  ;;  %v2493_v26 = vand.u32 4294901760, %v2492_v24  ;;  %v3409_v36 = vand.u32 4294901760, %v3408_v34 }
 0x1c2   :  { %5020 = vmatpush3.xpose.msra.mxu1 %v665_v61  ;;  %5072 = vmatmul.mubr.f32.vlgmr.msra.gmra.mrb[2].mxu0 %v1575_v12  ;;  %v2503_v25 = vsub.f32 %v2501_v21, %v2502_v23  ;;  %v3419_v35 = vsub.f32 %v3339_v31, %v3342_v33 }
 0x1c3   :  { %5075 = vmatpush3.xpose.msra.mxu0 %v1586_v13  ;;  %5021 = vmatprep.mubr.msk.f32.mxu1 %vm5652_vm0, %v5653_v1  ;;  %v3410_v38 = vsub.f32 %v3408_v34, %v3409_v36 }
 0x1c4   :  { %5024 = vmatprep.subr.mxu1 %v5653_v1  ;;  %5076 = vmatprep.mubr.msk.f32.mxu0 %vm5652_vm0, %v5653_v1  ;;  %v2504_v27 = vand.u32 4294901760, %v2503_v25  ;;  %v3420_v37 = vand.u32 4294901760, %v3419_v35 }
 0x1c5   :  { %5079 = vmatprep.subr.mxu0 %v5653_v1  ;;  %v3411_v40 = vand.u32 4294901760, %v3410_v38 }
 0x1c6   :  { %v3421_v39 = vsub.f32 %v3419_v35, %v3420_v37 }
 0x1c8   :  { %v3422_v41 = vand.u32 4294901760, %v3421_v39 }
 0x1c9   :  { %5022 = vmatmul.mubr.f32.vlgmr.msra.gmra.mrb[2].mxu1 %v654_v51 }
 0x1ca   :  { %5025 = vmatpush3.xpose.msra.mxu1 %v588_v59  ;;  %5077 = vmatmul.mubr.f32.vlgmr.msra.gmra.mrb[2].mxu0 %v5807_v4 }
 0x1cb   :  { %5080 = vmatpush3.xpose.msra.mxu0 %v1583_v60  ;;  %5026 = vmatprep.mubr.msk.f32.mxu1 %vm5652_vm0, %v5653_v1 }
 0x1cc   :  { %5029 = vmatprep.subr.mxu1 %v5653_v1  ;;  %5081 = vmatprep.mubr.msk.f32.mxu0 %vm5652_vm0, %v5653_v1 }
 0x1cd   :  { %5084 = vmatprep.subr.mxu0 %v5653_v1 }
 0x1d1   :  { %5027 = vmatmul.mubr.f32.vlgmr.msra.gmra.mrb[2].mxu1 %v655_v52 }
 0x1d2   :  { %5030 = vmatpush3.xpose.msra.mxu1 %v666_v3  ;;  %5082 = vmatmul.mubr.f32.vlgmr.msra.gmra.mrb[2].mxu0 %v1572_v7 }
 0x1d3   :  { %5085 = vmatpush3.xpose.msra.mxu0 %v5800_v58  ;;  %5031 = vmatprep.mubr.msk.f32.mxu1 %vm5652_vm0, %v5653_v1 }
 0x1d4   :  { %5034 = vmatprep.subr.mxu1 %v5653_v1  ;;  %5086 = vmatprep.mubr.msk.f32.mxu0 %vm5652_vm0, %v5653_v1 }
 0x1d5   :  { %5089 = vmatprep.subr.mxu0 %v5653_v1 }
 0x1d9   :  { %5032 = vmatmul.mubr.f32.vlgmr.msra.gmra.mrb[2].mxu1 %v5795_v50 }
 0x1da   :  { %5035 = vmatpush3.xpose.msra.mxu1 %v588_v59  ;;  %5087 = vmatmul.mubr.f32.vlgmr.msra.gmra.mrb[2].mxu0 %v1573_v9 }
 0x1db   :  { %5090 = vmatpush3.xpose.msra.mxu0 %v1584_v5  ;;  %5036 = vmatprep.mubr.msk.f32.mxu1 %vm5652_vm0, %v5653_v1 }
 0x1dc   :  { %5091 = vmatprep.mubr.msk.f32.mxu0 %vm5652_vm0, %v5653_v1  ;;  %5094 = vmatprep.subr.mxu0 %v5653_v1 }
 0x1dd   :  { %5039 = vmatprep.subr.mxu1 %v5653_v1 }
 0x1e1   :  { %5037 = vmatmul.mubr.f32.vlgmr.msra.gmra.mrb[2].mxu1 %v5795_v50 }
 0x1e2   :  { %5092 = vmatmul.mubr.f32.vlgmr.msra.gmra.mrb[2].mxu0 %v5807_v4  ;;  %5041 = vmatprep.mubr.msk.f32.mxu1 %vm5652_vm0, %v5653_v1 }
 0x1e3   :  { %5095 = vmatpush3.xpose.msra.mxu0 %v5800_v58  ;;  %5096 = vmatprep.mubr.msk.f32.mxu0 %vm5652_vm0, %v5653_v1 }
 0x1e4   :  { %5129 = vmatprep.subr.mxu0 %v5653_v1 }
 0x1ea   :  { %5097 = vmatmul.mubr.f32.vlgmr.msra.gmra.mrb[2].mxu0 %v5807_v4 }
 0x1eb   :  { %5130 = vmatpush3.xpose.msra.mxu0 %v2424_v19  ;;  %5131 = vmatprep.mubr.msk.f32.mxu0 %vm5652_vm0, %v5653_v1 }
 0x1ec   :  { %5134 = vmatprep.subr.mxu0 %v5653_v1 }
 0x1ee   :  { %5132 = vmatmul.mubr.f32.vlgmr.msra.gmra.mrb[4].mxu0 %v2493_v26 }
 0x1ef   :  { %5135 = vmatpush3.xpose.msra.mxu0 %v2504_v27  ;;  %5136 = vmatprep.mubr.msk.f32.mxu0 %vm5652_vm0, %v5653_v1 }
 0x1f0   :  { %5139 = vmatprep.subr.mxu0 %v5653_v1 }
 0x1f6   :  { %5137 = vmatmul.mubr.f32.vlgmr.msra.gmra.mrb[4].mxu0 %v2489_v18 }
 0x1f7   :  { %5140 = vmatpush3.xpose.msra.mxu0 %v2501_v21  ;;  %5141 = vmatprep.mubr.msk.f32.mxu0 %vm5652_vm0, %v5653_v1 }
 0x1f8   :  { %5144 = vmatprep.subr.mxu0 %v5653_v1 }
 0x1fe   :  { %5142 = vmatmul.mubr.f32.vlgmr.msra.gmra.mrb[4].mxu0 %v2490_v20 }
 0x1ff   :  { %5145 = vmatpush3.xpose.msra.mxu0 %v2424_v19  ;;  %5146 = vmatprep.mubr.msk.f32.mxu0 %vm5652_vm0, %v5653_v1 }
 0x200   :  { %5149 = vmatprep.subr.mxu0 %v5653_v1 }
 0x206   :  { %5147 = vmatmul.mubr.f32.vlgmr.msra.gmra.mrb[4].mxu0 %v2491_v22 }
 0x207   :  { %5150 = vmatpush3.xpose.msra.mxu0 %v2502_v23  ;;  %5151 = vmatprep.mubr.msk.f32.mxu0 %vm5652_vm0, %v5653_v1 }
 0x208   :  { %5154 = vmatprep.subr.mxu0 %v5653_v1 }
 0x20e   :  { %5152 = vmatmul.mubr.f32.vlgmr.msra.gmra.mrb[4].mxu0 %v2489_v18 }
 0x20f   :  { %5155 = vmatpush3.xpose.msra.mxu0 %v2424_v19  ;;  %5156 = vmatprep.mubr.msk.f32.mxu0 %vm5652_vm0, %v5653_v1 }
 0x210   :  { %5189 = vmatprep.subr.mxu0 %v5653_v1 }
 0x216   :  { %5157 = vmatmul.mubr.f32.vlgmr.msra.gmra.mrb[4].mxu0 %v2489_v18 }
 0x217   :  { %5190 = vmatpush3.xpose.msra.mxu0 %v3342_v33  ;;  %5191 = vmatprep.mubr.msk.f32.mxu0 %vm5652_vm0, %v5653_v1 }
 0x218   :  { %5194 = vmatprep.subr.mxu0 %v5653_v1 }
 0x21a   :  { %5192 = vmatmul.mubr.f32.vlgmr.msra.gmra.mrb[6].mxu0 %v3411_v40 }
 0x21b   :  { %5195 = vmatpush3.xpose.msra.mxu0 %v3422_v41  ;;  %5196 = vmatprep.mubr.msk.f32.mxu0 %vm5652_vm0, %v5653_v1 }
 0x21c   :  { %5199 = vmatprep.subr.mxu0 %v5653_v1 }
 0x222   :  { %5197 = vmatmul.mubr.f32.vlgmr.msra.gmra.mrb[6].mxu0 %v3407_v32 }
 0x223   :  { %5200 = vmatpush3.xpose.msra.mxu0 %v3419_v35  ;;  %5201 = vmatprep.mubr.msk.f32.mxu0 %vm5652_vm0, %v5653_v1 }
 0x224   :  { %5204 = vmatprep.subr.mxu0 %v5653_v1 }
 0x22a   :  { %5202 = vmatmul.mubr.f32.vlgmr.msra.gmra.mrb[6].mxu0 %v3408_v34 }
 0x22b   :  { %5205 = vmatpush3.xpose.msra.mxu0 %v3342_v33  ;;  %5206 = vmatprep.mubr.msk.f32.mxu0 %vm5652_vm0, %v5653_v1 }
 0x22c   :  { %5209 = vmatprep.subr.mxu0 %v5653_v1 }
 0x232   :  { %5207 = vmatmul.mubr.f32.vlgmr.msra.gmra.mrb[6].mxu0 %v3409_v36 }
 0x233   :  { %5210 = vmatpush3.xpose.msra.mxu0 %v3420_v37  ;;  %5211 = vmatprep.mubr.msk.f32.mxu0 %vm5652_vm0, %v5653_v1 }
 0x234   :  { %5214 = vmatprep.subr.mxu0 %v5653_v1 }
 0x23a   :  { %5212 = vmatmul.mubr.f32.vlgmr.msra.gmra.mrb[6].mxu0 %v3407_v32 }
 0x23b   :  { %5215 = vmatpush3.xpose.msra.mxu0 %v3342_v33  ;;  %5216 = vmatprep.mubr.msk.f32.mxu0 %vm5652_vm0, %v5653_v1 }
 0x23c   :  { %5351 = vmatprep.subr.bf16.mxu0 %v5651_v0 }
 0x242   :  { %5217 = vmatmul.mubr.f32.vlgmr.msra.gmra.mrb[6].mxu0 %v3407_v32 }
 0x243   :  { %5257 = vmatprep.mubr.msk.f32.mxu0 %vm5652_vm0, %v5653_v1 }
 0x2b4   :  { %v1029_v43 = vpop.f32.mrb[2].mxu1 }
 0x2b5   :  { %v1033_v44 = vmul.f32 %v1029_v43, %v76_v42  ;;  %v5038_v45 = vpop.f32.mrb[3].mxu1 }
 0x2b7   :  { %v1034_v46 = vsel %vm581_vm2, %v1033_v44, -inf }
 0x2b8   :  { %1035 = vmax.xlane.f32.xlu1 %v1034_v46 }
 0x2bd   :  { %v1947_v48 = vpop.f32.mrb[2].mxu0 }
 0x2be   :  { %v1951_v49 = vmul.f32 %v1947_v48, %v76_v42  ;;  %v5098_v50 = vpop.f32.mrb[3].mxu0 }
 0x2c0   :  { %v1952_v51 = vsel %vm581_vm2, %v1951_v49, -inf }
 0x2c1   :  { %1953 = vmax.xlane.f32.xlu0 %v1952_v51 }
 0x2e9   :  { %v2865_v52 = vpop.f32.mrb[4].mxu0 }
 0x2ea   :  { %v2869_v53 = vmul.f32 %v2865_v52, %v76_v42  ;;  %v5158_v54 = vpop.f32.mrb[5].mxu0 }
 0x2ec   :  { %v2870_v55 = vsel %vm581_vm2, %v2869_v53, -inf }
 0x2ed   :  { %2871 = vmax.xlane.f32.xlu1 %v2870_v55 }
 0x315   :  { %v3783_v56 = vpop.f32.mrb[6].mxu0 }
 0x316   :  { %v3787_v57 = vmul.f32 %v3783_v56, %v76_v42  ;;  %v5218_v58 = vpop.f32.mrb[7].mxu0 }
 0x318   :  { %v3788_v59 = vsel %vm581_vm2, %v3787_v57, -inf }
 0x319   :  { %3789 = vmax.xlane.f32.xlu1 %v3788_v59 }
 0x345   :  { %v1036_v60 = vpop.xlane.xlu1 %1035 }
 0x346   :  { %v1037_v61 = vsub.f32 %v1033_v44, %v1036_v60 }
 0x348   :  { %v1038_v62 = vmul.f32 1.442695, %v1037_v61 }
 0x34a   :  { %5511 = vpow2.f32 %v1038_v62 }
 0x34e   :  { %v1954_v63 = vpop.xlane.xlu0 %1953 }
 0x34f   :  { %v1955_v2 = vsub.f32 %v1951_v49, %v1954_v63 }
 0x351   :  { %v1956_v3 = vmul.f32 1.442695, %v1955_v2 }
 0x353   :  { %5513 = vpow2.f32 %v1956_v3 }
 0x354   :  { %v5512_v4 = vpop.eup %5511 }
 0x355   :  { %v1040_v5 = vsel %vm581_vm2, %v5512_v4, 0.0 }
 0x356   :  { %1041 = vadd.xlane.f32.xlu0 %v1040_v5 }
 0x35d   :  { %v5514_v6 = vpop.eup %5513 }
 0x35e   :  { %v1958_v7 = vsel %vm581_vm2, %v5514_v6, 0.0 }
 0x35f   :  { %1959 = vadd.xlane.f32.xlu1 %v1958_v7 }
 0x36c   :  { %1045 = vrot.lane.b32.xlu0 %v5787_v47, %s5661_s27 }
 0x370   :  { %1963 = vrot.lane.b32.xlu1 %v5787_v47, %s5662_s28 }
 0x374   :  { %2881 = vrot.lane.b32.xlu1 %v5787_v47, %s5663_s29 }
 0x37a   :  { %v2872_v8 = vpop.xlane.xlu1 %2871 }
 0x37b   :  { %v2873_v9 = vsub.f32 %v2869_v53, %v2872_v8 }
 0x37d   :  { %v2874_v10 = vmul.f32 1.442695, %v2873_v9 }
 0x37f   :  { %5515 = vpow2.f32 %v2874_v10 }
 0x389   :  { %v5901_v11 = vpop.eup %5515 }
 0x38a   :  { %v2876_v12 = vsel %vm581_vm2, %v5901_v11, 0.0 }
 0x38b   :  { %2877 = vadd.xlane.f32.xlu0 %v2876_v12 }
 0x3a1   :  { %3799 = vrot.lane.b32.xlu0 %v5787_v47, %s5664_s30 }
 0x3a6   :  { %v3790_v13 = vpop.xlane.xlu1 %3789 }
 0x3a7   :  { %v3791_v14 = vsub.f32 %v3787_v57, %v3790_v13 }
 0x3a9   :  { %v3792_v15 = vmul.f32 1.442695, %v3791_v14 }
 0x3ab   :  { %5517 = vpow2.f32 %v3792_v15 }
 0x3b5   :  { %v5906_v16 = vpop.eup %5517 }
 0x3b6   :  { %v3794_v17 = vsel %vm581_vm2, %v5906_v16, 0.0 }
 0x3b7   :  { %3795 = vadd.xlane.f32.xlu1 %v3794_v17 }
 0x3e3   :  { %v1042_v18 = vpop.xlane.xlu0 %1041 }
 0x3e4   :  { %5519 = vrcp.f32 %v1042_v18 }
 0x3e7   :  { %v1046_v19 = vpop.permute.xlu0 %1045 }
 0x3e8   :  { %v1052_v20 = vand.u32 4294901760, %v1046_v19 }
 0x3ea   :  { %5040 = vmatpush3.msra.mxu1 %v1052_v20  ;;  %v1129_v47 = vsub.f32 %v1046_v19, %v1052_v20 }
 0x3eb   :  { %5044 = vmatprep.subr.mxu1 %v5653_v1 }
 0x3ec   :  { %v1130_v25 = vand.u32 4294901760, %v1129_v47  ;;  %v1960_v32 = vpop.xlane.xlu1 %1959 }
 0x3ed   :  { %5521 = vrcp.f32 %v1960_v32 }
 0x3ee   :  { %v5520_v21 = vpop.eup %5519  ;;  %v1131_v28 = vsub.f32 %v1129_v47, %v1130_v25 }
 0x3ef   :  { %v1044_v22 = vmul.f32 %v5520_v21, %v5512_v4 }
 0x3f0   :  { %v1132_v31 = vand.u32 4294901760, %v1131_v28  ;;  %v1964_v36 = vpop.permute.xlu1 %1963  ;;  %v4270_v28 = vld [vmem:[#allocation8 + $0x10] sm:$0xff] }
 0x3f1   :  { %v1049_v23 = vsel %vm581_vm2, %v1044_v22, 0  ;;  %v1970_v38 = vand.u32 4294901760, %v1964_v36  ;;  %v4268_v22 = vld [vmem:[#allocation8] sm:$0xff] }
 0x3f2   :  { %v1117_v24 = vand.u32 4294901760, %v1049_v23 }
 0x3f3   :  { %v2047_v40 = vsub.f32 %v1964_v36, %v1970_v38 }
 0x3f4   :  { %v1118_v26 = vsub.f32 %v1049_v23, %v1117_v24  ;;  %v2882_v52 = vpop.permute.xlu1 %2881  ;;  %v4283_v23 = vand.u32 4294901760, %v4268_v22 }
 0x3f5   :  { %v2048_v42 = vand.u32 4294901760, %v2047_v40  ;;  %v2888_v54 = vand.u32 4294901760, %v2882_v52 }
 0x3f6   :  { %v1119_v27 = vand.u32 4294901760, %v1118_v26 }
 0x3f7   :  { %v5522_v33 = vpop.eup %5521  ;;  %v2049_v44 = vsub.f32 %v2047_v40, %v2048_v42  ;;  %v2965_v56 = vsub.f32 %v2882_v52, %v2888_v54 }
 0x3f8   :  { %v1120_v29 = vsub.f32 %v1118_v26, %v1119_v27  ;;  %v1962_v34 = vmul.f32 %v5522_v33, %v5514_v6 }
 0x3f9   :  { %v2050_v46 = vand.u32 4294901760, %v2049_v44  ;;  %v2966_v58 = vand.u32 4294901760, %v2965_v56 }
 0x3fa   :  { %v1121_v30 = vand.u32 4294901760, %v1120_v29  ;;  %v1967_v35 = vsel %vm581_vm2, %v1962_v34, 0  ;;  %v4271_v29 = vld [vmem:[#allocation8 + $0x18] sm:$0xff] }
 0x3fb   :  { %v2035_v37 = vand.u32 4294901760, %v1967_v35  ;;  %v2967_v60 = vsub.f32 %v2965_v56, %v2966_v58 }
 0x3fc   :  { %5042 = vmatmul.mubr.f32.vlgmr.msra.gmra.mrb[4].mxu1 %v1121_v30  ;;  %v4289_v30 = vand.u32 4294901760, %v4270_v28 }
 0x3fd   :  { %5045 = vmatpush3.msra.mxu1 %v1132_v31  ;;  %5046 = vmatprep.mubr.msk.f32.mxu1 %vm5652_vm0, %v5653_v1  ;;  %v2036_v39 = vsub.f32 %v1967_v35, %v2035_v37  ;;  %v2968_v62 = vand.u32 4294901760, %v2967_v60  ;;  %v4292_v31 = vand.u32 4294901760, %v4271_v29 }
 0x3fe   :  { %5049 = vmatprep.subr.mxu1 %v5653_v1  ;;  %v4377_v35 = vsub.f32 %v4270_v28, %v4289_v30 }
 0x3ff   :  { %v2037_v41 = vand.u32 4294901760, %v2036_v39  ;;  %v5990_v34 = vpack.c.bf16 %v4292_v31, %v4289_v30  ;;  %v4384_v36 = vsub.f32 %v4271_v29, %v4292_v31 }
 0x401   :  { %v2038_v43 = vsub.f32 %v2036_v39, %v2037_v41 }
 0x403   :  { %v2039_v45 = vand.u32 4294901760, %v2038_v43 }
 0x404   :  { %5047 = vmatmul.mubr.f32.vlgmr.msra.gmra.mrb[4].mxu1 %v1117_v24 }
 0x405   :  { %5050 = vmatpush3.msra.mxu1 %v1129_v47  ;;  %5051 = vmatprep.mubr.msk.f32.mxu1 %vm5652_vm0, %v5653_v1  ;;  %v4269_v47 = vld [vmem:[#allocation8 + $0x8] sm:$0xff] }
 0x406   :  { %5054 = vmatprep.subr.mxu1 %v5653_v1 }
 0x40c   :  { %5052 = vmatmul.mubr.f32.vlgmr.msra.gmra.mrb[4].mxu1 %v1118_v26  ;;  %v4363_v26 = vsub.f32 %v4268_v22, %v4283_v23 }
 0x40d   :  { %5055 = vmatpush3.msra.mxu1 %v1052_v20  ;;  %5056 = vmatprep.mubr.msk.f32.mxu1 %vm5652_vm0, %v5653_v1 }
 0x40e   :  { %5059 = vmatprep.subr.mxu1 %v5653_v1  ;;  %v4364_v32 = vand.u32 4294901760, %v4363_v26 }
 0x414   :  { %5057 = vmatmul.mubr.f32.vlgmr.msra.gmra.mrb[4].mxu1 %v1119_v27 }
 0x415   :  { %5060 = vmatpush3.msra.mxu1 %v1130_v25  ;;  %5061 = vmatprep.mubr.msk.f32.mxu1 %vm5652_vm0, %v5653_v1 }
 0x416   :  { %5064 = vmatprep.subr.mxu1 %v5653_v1 }
 0x418   :  { %v2878_v48 = vpop.xlane.xlu0 %2877 }
 0x419   :  { %5523 = vrcp.f32 %v2878_v48 }
 0x41c   :  { %5062 = vmatmul.mubr.f32.vlgmr.msra.gmra.mrb[4].mxu1 %v1117_v24  ;;  %v3800_v5 = vpop.permute.xlu0 %3799 }
 0x41d   :  { %5065 = vmatpush3.msra.mxu1 %v1052_v20  ;;  %5066 = vmatprep.mubr.msk.f32.mxu1 %vm5652_vm0, %v5653_v1  ;;  %v3806_v7 = vand.u32 4294901760, %v3800_v5 }
 0x41e   :  { %5099 = vmatprep.subr.mxu1 %v5653_v1 }
 0x41f   :  { %v3883_v9 = vsub.f32 %v3800_v5, %v3806_v7 }
 0x423   :  { %v5524_v49 = vpop.eup %5523 }
 0x424   :  { %5067 = vmatmul.mubr.f32.vlgmr.msra.gmra.mrb[4].mxu1 %v1117_v24  ;;  %v2880_v50 = vmul.f32 %v5524_v49, %v5901_v11  ;;  %v3884_v11 = vand.u32 4294901760, %v3883_v9  ;;  %v4286_v24 = vand.u32 4294901760, %v4269_v47 }
 0x425   :  { %5100 = vmatpush3.msra.mxu1 %v1970_v38  ;;  %5101 = vmatprep.mubr.msk.f32.mxu1 %vm5652_vm0, %v5653_v1 }
 0x426   :  { %5104 = vmatprep.subr.mxu1 %v5653_v1  ;;  %v2885_v51 = vsel %vm581_vm2, %v2880_v50, 0  ;;  %v3885_v13 = vsub.f32 %v3883_v9, %v3884_v11  ;;  %v5986_v25 = vpack.c.bf16 %v4286_v24, %v4283_v23  ;;  %v4370_v27 = vsub.f32 %v4269_v47, %v4286_v24 }
 0x427   :  { %v2953_v53 = vand.u32 4294901760, %v2885_v51 }
 0x428   :  { %5102 = vmatmul.mubr.f32.vlgmr.msra.gmra.mrb[6].mxu1 %v2039_v45  ;;  %v3886_v15 = vand.u32 4294901760, %v3885_v13  ;;  %5353 = vmatpush3.bf16.msra.mxu0 %v5986_v25  ;;  %v4371_v33 = vand.u32 4294901760, %v4370_v27  ;;  %v5364_v52 = vpack.c.bf16 %v4370_v27, %v4363_v26 }
 0x429   :  { %5105 = vmatpush3.msra.mxu1 %v2050_v46  ;;  %5106 = vmatprep.mubr.msk.f32.mxu1 %vm5652_vm0, %v5653_v1  ;;  %v2954_v55 = vsub.f32 %v2885_v51, %v2953_v53 }
 0x42a   :  { %5109 = vmatprep.subr.mxu1 %v5653_v1  ;;  %5354 = vmatprep.subr.bf16.mxu0 %v5651_v0 }
 0x42b   :  { %v2955_v57 = vand.u32 4294901760, %v2954_v55 }
 0x42c   :  { %5356 = vmatpush3.bf16.msra.mxu0 %v5990_v34 }
 0x42d   :  { %v2956_v59 = vsub.f32 %v2954_v55, %v2955_v57  ;;  %5357 = vmatprep.subr.bf16.mxu0 %v5651_v0 }
 0x42f   :  { %v2957_v61 = vand.u32 4294901760, %v2956_v59 }
 0x430   :  { %5107 = vmatmul.mubr.f32.vlgmr.msra.gmra.mrb[6].mxu1 %v2035_v37 }
 0x431   :  { %5110 = vmatpush3.msra.mxu1 %v2047_v40  ;;  %5111 = vmatprep.mubr.msk.f32.mxu1 %vm5652_vm0, %v5653_v1  ;;  %v4378_v40 = vand.u32 4294901760, %v4377_v35 }
 0x432   :  { %5114 = vmatprep.subr.mxu1 %v5653_v1 }
 0x433   :  { %v4379_v44 = vsub.f32 %v4377_v35, %v4378_v40 }
 0x435   :  { %v4380_v49 = vand.u32 4294901760, %v4379_v44 }
 0x438   :  { %5112 = vmatmul.mubr.f32.vlgmr.msra.gmra.mrb[6].mxu1 %v2036_v39 }
 0x439   :  { %5115 = vmatpush3.msra.mxu1 %v1970_v38  ;;  %5116 = vmatprep.mubr.msk.f32.mxu1 %vm5652_vm0, %v5653_v1 }
 0x43a   :  { %5119 = vmatprep.subr.mxu1 %v5653_v1 }
 0x440   :  { %5117 = vmatmul.mubr.f32.vlgmr.msra.gmra.mrb[6].mxu1 %v2037_v41  ;;  %v4385_v41 = vand.u32 4294901760, %v4384_v36 }
 0x441   :  { %5120 = vmatpush3.msra.mxu1 %v2048_v42  ;;  %5121 = vmatprep.mubr.msk.f32.mxu1 %vm5652_vm0, %v5653_v1 }
 0x442   :  { %5124 = vmatprep.subr.mxu1 %v5653_v1  ;;  %v4386_v45 = vsub.f32 %v4384_v36, %v4385_v41 }
 0x444   :  { %v3796_v63 = vpop.xlane.xlu1 %3795  ;;  %v4387_v50 = vand.u32 4294901760, %v4386_v45 }
 0x445   :  { %5525 = vrcp.f32 %v3796_v63 }
 0x446   :  { %v5361_v51 = vpack.c.bf16 %v4387_v50, %v4380_v49 }
 0x448   :  { %5122 = vmatmul.mubr.f32.vlgmr.msra.gmra.mrb[6].mxu1 %v2035_v37 }
 0x449   :  { %5125 = vmatpush3.msra.mxu1 %v1970_v38  ;;  %5126 = vmatprep.mubr.msk.f32.mxu1 %vm5652_vm0, %v5653_v1  ;;  %v4372_v38 = vsub.f32 %v4370_v27, %v4371_v33 }
 0x44a   :  { %5159 = vmatprep.subr.mxu1 %v5653_v1 }
 0x44b   :  { %v4373_v42 = vand.u32 4294901760, %v4372_v38 }
 0x44f   :  { %v5526_v2 = vpop.eup %5525 }
 0x450   :  { %5127 = vmatmul.mubr.f32.vlgmr.msra.gmra.mrb[6].mxu1 %v2035_v37  ;;  %v3798_v3 = vmul.f32 %v5526_v2, %v5906_v16  ;;  %v4365_v37 = vsub.f32 %v4363_v26, %v4364_v32 }
 0x451   :  { %5160 = vmatpush3.msra.mxu1 %v2888_v54  ;;  %5161 = vmatprep.mubr.msk.f32.mxu1 %vm5652_vm0, %v5653_v1 }
 0x452   :  { %5164 = vmatprep.subr.mxu1 %v5653_v1  ;;  %v3803_v4 = vsel %vm581_vm2, %v3798_v3, 0  ;;  %v4366_v39 = vand.u32 4294901760, %v4365_v37 }
 0x453   :  { %v3871_v6 = vand.u32 4294901760, %v3803_v4 }
 0x454   :  { %5162 = vmatmul.mubr.f32.vlgmr.msra.gmra.mrb[8].mxu1 %v2957_v61  ;;  %v5358_v48 = vpack.c.bf16 %v4373_v42, %v4366_v39 }
 0x455   :  { %5165 = vmatpush3.msra.mxu1 %v2968_v62  ;;  %5166 = vmatprep.mubr.msk.f32.mxu1 %vm5652_vm0, %v5653_v1  ;;  %v3872_v8 = vsub.f32 %v3803_v4, %v3871_v6 }
 0x456   :  { %5169 = vmatprep.subr.mxu1 %v5653_v1 }
 0x457   :  { %v3873_v10 = vand.u32 4294901760, %v3872_v8 }
 0x459   :  { %v3874_v12 = vsub.f32 %v3872_v8, %v3873_v10 }
 0x45b   :  { %v3875_v14 = vand.u32 4294901760, %v3874_v12 }
 0x45c   :  { %5167 = vmatmul.mubr.f32.vlgmr.msra.gmra.mrb[8].mxu1 %v2953_v53 }
 0x45d   :  { %5170 = vmatpush3.msra.mxu1 %v2965_v56  ;;  %5171 = vmatprep.mubr.msk.f32.mxu1 %vm5652_vm0, %v5653_v1 }
 0x45e   :  { %5174 = vmatprep.subr.mxu1 %v5653_v1 }
 0x464   :  { %5172 = vmatmul.mubr.f32.vlgmr.msra.gmra.mrb[8].mxu1 %v2954_v55  ;;  %v5379_v55 = vpack.c.bf16 %v4385_v41, %v4378_v40 }
 0x465   :  { %5175 = vmatpush3.msra.mxu1 %v2888_v54  ;;  %5176 = vmatprep.mubr.msk.f32.mxu1 %vm5652_vm0, %v5653_v1 }
 0x466   :  { %5179 = vmatprep.subr.mxu1 %v5653_v1 }
 0x46c   :  { %5177 = vmatmul.mubr.f32.vlgmr.msra.gmra.mrb[8].mxu1 %v2955_v57 }
 0x46d   :  { %5180 = vmatpush3.msra.mxu1 %v2966_v58  ;;  %5181 = vmatprep.mubr.msk.f32.mxu1 %vm5652_vm0, %v5653_v1 }
 0x46e   :  { %5184 = vmatprep.subr.mxu1 %v5653_v1 }
 0x474   :  { %5182 = vmatmul.mubr.f32.vlgmr.msra.gmra.mrb[8].mxu1 %v2953_v53 }
 0x475   :  { %5185 = vmatpush3.msra.mxu1 %v2888_v54  ;;  %5186 = vmatprep.mubr.msk.f32.mxu1 %vm5652_vm0, %v5653_v1  ;;  %v5376_v54 = vpack.c.bf16 %v4371_v33, %v4364_v32 }
 0x476   :  { %5219 = vmatprep.subr.mxu1 %v5653_v1 }
 0x47c   :  { %5187 = vmatmul.mubr.f32.vlgmr.msra.gmra.mrb[8].mxu1 %v2953_v53  ;;  %v5367_v53 = vpack.c.bf16 %v4384_v36, %v4377_v35 }
 0x47d   :  { %5220 = vmatpush3.msra.mxu1 %v3806_v7  ;;  %5221 = vmatprep.mubr.msk.f32.mxu1 %vm5652_vm0, %v5653_v1 }
 0x47e   :  { %5224 = vmatprep.subr.mxu1 %v5653_v1 }
 0x480   :  { %5222 = vmatmul.mubr.f32.vlgmr.msra.gmra.mrb[10].mxu1 %v3875_v14 }
 0x481   :  { %5225 = vmatpush3.msra.mxu1 %v3886_v15  ;;  %5226 = vmatprep.mubr.msk.f32.mxu1 %vm5652_vm0, %v5653_v1 }
 0x482   :  { %5229 = vmatprep.subr.mxu1 %v5653_v1 }
 0x488   :  { %5227 = vmatmul.mubr.f32.vlgmr.msra.gmra.mrb[10].mxu1 %v3871_v6 }
 0x489   :  { %5230 = vmatpush3.msra.mxu1 %v3883_v9  ;;  %5231 = vmatprep.mubr.msk.f32.mxu1 %vm5652_vm0, %v5653_v1 }
 0x48a   :  { %5234 = vmatprep.subr.mxu1 %v5653_v1 }
 0x490   :  { %5232 = vmatmul.mubr.f32.vlgmr.msra.gmra.mrb[10].mxu1 %v3872_v8 }
 0x491   :  { %5235 = vmatpush3.msra.mxu1 %v3806_v7  ;;  %5236 = vmatprep.mubr.msk.f32.mxu1 %vm5652_vm0, %v5653_v1 }
 0x492   :  { %5239 = vmatprep.subr.mxu1 %v5653_v1 }
 0x498   :  { %5237 = vmatmul.mubr.f32.vlgmr.msra.gmra.mrb[10].mxu1 %v3873_v10 }
 0x499   :  { %5240 = vmatpush3.msra.mxu1 %v3884_v11  ;;  %5241 = vmatprep.mubr.msk.f32.mxu1 %vm5652_vm0, %v5653_v1 }
 0x49a   :  { %5244 = vmatprep.subr.mxu1 %v5653_v1 }
 0x4a0   :  { %5242 = vmatmul.mubr.f32.vlgmr.msra.gmra.mrb[10].mxu1 %v3871_v6 }
 0x4a1   :  { %5245 = vmatpush3.msra.mxu1 %v3806_v7  ;;  %5246 = vmatprep.mubr.msk.f32.mxu1 %vm5652_vm0, %v5653_v1 }
 0x4a8   :  { %5247 = vmatmul.mubr.f32.vlgmr.msra.gmra.mrb[10].mxu1 %v3871_v6  ;;  %v4786_v6 = vld [vmem:[%s6040_s5] ss:$0 sm:$0xff] }
 0x4f7   :  { %v1493_v16 = vpop.f32.mrb[4].mxu1 }
 0x4f8   :  { %v5068_v17 = vpop.f32.mrb[5].mxu1 }
 0x523   :  { %v2411_v18 = vpop.f32.mrb[6].mxu1 }
 0x524   :  { %4252 = vrot.lane.b32.xlu1 %v2411_v18, %s5649_s24  ;;  %v5128_v19 = vpop.f32.mrb[7].mxu1  ;;  %s5666_s24 = smov 24  }
 0x54f   :  { %v3329_v20 = vpop.f32.mrb[8].mxu1 }
 0x550   :  { %4256 = vrot.lane.b32.xlu0 %v3329_v20, %s5665_s0  ;;  %v5188_v21 = vpop.f32.mrb[9].mxu1 }
 0x57b   :  { %v4247_v43 = vpop.f32.mrb[10].mxu1 }
 0x57c   :  { %4260 = vrot.lane.b32.xlu0 %v4247_v43, %s5666_s24  ;;  %v5248_v46 = vpop.f32.mrb[11].mxu1 }
 0x596   :  { %v4253_v56 = vpop.permute.xlu1 %4252 }
 0x597   :  { %v4263_v58 = vsel %vm581_vm2, %v1493_v16, %v4253_v56 }
 0x5c2   :  { %v4257_v57 = vpop.permute.xlu0 %4256 }
 0x5c3   :  { %v4265_v59 = vsel %vm4264_vm3, %v4263_v58, %v4257_v57 }
 0x5ee   :  { %v4261_v60 = vpop.permute.xlu0 %4260 }
 0x5ef   :  { %v4267_v61 = vsel %vm4266_vm4, %v4265_v59, %v4261_v60 }
 0x5f0   :  { %v4280_v62 = vsel %vm88_vm1, %v4267_v61, 0 }
 0x5f1   :  { %v4351_v63 = vand.u32 4294901760, %v4280_v62 }
 0x5f3   :  { %v4352_v2 = vsub.f32 %v4280_v62, %v4351_v63 }
 0x5f5   :  { %v4353_v3 = vand.u32 4294901760, %v4352_v2 }
 0x5f7   :  { %v4354_v4 = vsub.f32 %v4352_v2, %v4353_v3 }
 0x5f9   :  { %v4355_v5 = vand.u32 4294901760, %v4354_v4 }
 0x5fb   :  { %5258 = vmatmul.mubr.f32.vlgmr.msra.gmra.mrb[8].mxu0 %v4355_v5 }
 0x5fc   :  { %5359 = vmatpush3.bf16.msra.mxu0 %v5358_v48  ;;  %5268 = vmatprep.mubr.msk.f32.mxu0 %vm5652_vm0, %v5653_v1 }
 0x5fd   :  { %5360 = vmatprep.subr.bf16.mxu0 %v5651_v0 }
 0x600   :  { %5362 = vmatpush3.bf16.msra.mxu0 %v5361_v51 }
 0x601   :  { %5363 = vmatprep.subr.bf16.mxu0 %v5651_v0 }
 0x603   :  { %5269 = vmatmul.mubr.f32.vlgmr.msra.gmra.mrb[8].mxu0 %v4351_v63 }
 0x604   :  { %5365 = vmatpush3.bf16.msra.mxu0 %v5364_v52  ;;  %5279 = vmatprep.mubr.msk.f32.mxu0 %vm5652_vm0, %v5653_v1 }
 0x605   :  { %5366 = vmatprep.subr.bf16.mxu0 %v5651_v0 }
 0x608   :  { %5368 = vmatpush3.bf16.msra.mxu0 %v5367_v53 }
 0x609   :  { %5369 = vmatprep.subr.bf16.mxu0 %v5651_v0 }
 0x60b   :  { %5280 = vmatmul.mubr.f32.vlgmr.msra.gmra.mrb[8].mxu0 %v4352_v2 }
 0x60c   :  { %5371 = vmatpush3.bf16.msra.mxu0 %v5986_v25  ;;  %5290 = vmatprep.mubr.msk.f32.mxu0 %vm5652_vm0, %v5653_v1 }
 0x60d   :  { %5372 = vmatprep.subr.bf16.mxu0 %v5651_v0 }
 0x610   :  { %5374 = vmatpush3.bf16.msra.mxu0 %v5990_v34 }
 0x611   :  { %5375 = vmatprep.subr.bf16.mxu0 %v5651_v0 }
 0x613   :  { %5291 = vmatmul.mubr.f32.vlgmr.msra.gmra.mrb[8].mxu0 %v4353_v3 }
 0x614   :  { %5377 = vmatpush3.bf16.msra.mxu0 %v5376_v54  ;;  %5301 = vmatprep.mubr.msk.f32.mxu0 %vm5652_vm0, %v5653_v1 }
 0x615   :  { %5378 = vmatprep.subr.bf16.mxu0 %v5651_v0 }
 0x618   :  { %5380 = vmatpush3.bf16.msra.mxu0 %v5379_v55 }
 0x619   :  { %5381 = vmatprep.subr.bf16.mxu0 %v5651_v0 }
 0x61b   :  { %5302 = vmatmul.mubr.f32.vlgmr.msra.gmra.mrb[8].mxu0 %v4351_v63 }
 0x61c   :  { %5383 = vmatpush3.bf16.msra.mxu0 %v5986_v25  ;;  %5312 = vmatprep.mubr.msk.f32.mxu0 %vm5652_vm0, %v5653_v1 }
 0x61d   :  { %5384 = vmatprep.subr.bf16.mxu0 %v5651_v0 }
 0x620   :  { %5386 = vmatpush3.bf16.msra.mxu0 %v5990_v34 }
 0x623   :  { %5313 = vmatmul.mubr.f32.vlgmr.msra.gmra.mrb[8].mxu0 %v4351_v63 }
 0x6f6   :  { %v4763_v7 = vpop.f32.mrb[8].mxu0 }
 0x6f7   :  { %v5389_v8 = vadd.f32 %v4786_v6, %v4763_v7  ;;  %v5314_v9 = vpop.f32.mrb[9].mxu0 }
 0x6f9   :  { %4767 = vst.msk [vmem:[#allocation10] sm:$0xff] %vm88_vm1, %v5389_v8 }
 0x6fa   :  { %5626 = shalt.err (!%p5623_p8)
}
 0x6fb   :  { %s5627_s14 = scalar_lea.hbm %s6041_s6, 128 }
 0x6fc   :  { %p5628_p9 = scmp.ne.s32.totalorder %s6041_s6, %s5627_s14  ;;  %p5631_p10 = scmp.lt.u32.totalorder %s5627_s14, %s6041_s6 }
 0x6fe   :  { %p5633_p11 = pnand %p5631_p10, %p5628_p9 }
 0x700   :  { %5636 = shalt.err (!%p5633_p11)
}
 0x701   :  { %4777 = dma.vmem_to_hbm [thread:$0]  %s4775_s10, 128, %s6041_s6, [#allocation4]  }
 0x702   :  { %5643 = dma.done.wait [#allocation4], 128  }
 0x703   :  { %5644 = vsyncadd [#allocation4], 4294967168 }
 0x704   :  { %4781 = vsyncpa [#allocation3], 1 }
 0x705   :  { %4782 = vsyncpa [#allocation6], 1 }
 0x706   :  { %4783 = vsyncpa [#allocation9], 1 }
 0x707   :  { %4784 = vsyncpa [#allocation4], 1 }

</bundles_post_ra>
